<compile_context>
chip_gen: v5e
topology: v5e:2x2
jax: 0.10.0
libtpu: 0.0.40
codegen_flags: <defaults>
</compile_context>

<pallas_src>
import functools

import jax
import jax.numpy as jnp
import numpy as np
from jax.experimental import pallas as pl
from jax.experimental.pallas import tpu as pltpu

_MIB = 1024 * 1024


def _round_up(x, m):
    return ((x + m - 1) // m) * m


def _cdiv(a, b):
    return (a + b - 1) // b


def _vmem_capacity_bytes():
    """Physical VMEM per TensorCore (trace-time query, conservative fallback)."""
    try:
        return int(pltpu.get_tpu_info().vmem_capacity_bytes)
    except Exception:
        return 64 * _MIB  # v7x per-TC physical VMEM = smallest of v5e/v6e/v7x


def _greedy_ctc_kernel(blank, compute_dtype, emission_ref, halo_ref, out_ref):
    """One (batch b, time-tile i) grid step.

    emission_ref: (TILE_T, V)    current time tile (time = sublanes, labels = lanes)
    halo_ref:     (8, V)         the 8 emission rows ending right before this tile
    out_ref:      (1, 1, TILE_T) packed int32: argmax idx if kept, else -1 (lane-dense)
    """
    e = emission_ref[...]
    if compute_dtype is not None:
        e = e.astype(compute_dtype)  # post-load cast: HBM traffic stays in the input dtype
    tile_t, v = e.shape

    # ---- argmax over labels, laid out time-on-lanes ----
    # One XLU transpose of the tile (compact for small V: V pads to 32 sublanes
    # instead of 128 lanes), then every reduction is a sublane reduction and the
    # store is a single lane-dense (1, 1, TILE_T) unmasked vst.
    et = e.T                                               # (V, TILE_T)
    m = jnp.max(et, axis=0, keepdims=True)                 # (1, TILE_T)
    label = jax.lax.broadcasted_iota(jnp.int32, (v, tile_t), 0)
    # First-occurrence argmax (torch semantics). NOTE: NaN logits would yield idx == V.
    idx = jnp.min(jnp.where(et == m, label, jnp.int32(v)),
                  axis=0, keepdims=True).astype(jnp.int32)  # (1, TILE_T)

    # ---- previous-timestep index (lane shift) + cross-tile boundary carry ----
    prev = pltpu.roll(idx, shift=1, axis=1)                # lane 0 = wrap, fixed below

    h = halo_ref[7:8, :]                                   # (1, V) == emission[t0 - 1]
    if compute_dtype is not None:
        h = h.astype(compute_dtype)
    hm = jnp.max(h, axis=-1, keepdims=True)                # (1, 1)
    hlabel = jax.lax.broadcasted_iota(jnp.int32, (1, v), 1)
    hidx = jnp.min(jnp.where(h == hm, hlabel, jnp.int32(v)),
                   axis=-1, keepdims=True).astype(jnp.int32)   # (1, 1)

    is_first_tile = pl.program_id(1) == 0
    boundary_prev = jnp.where(is_first_tile,
                              jnp.full((1, 1), -1, jnp.int32), hidx)  # (1, 1)
    lane_pos = jax.lax.broadcasted_iota(jnp.int32, (1, tile_t), 1)
    prev = jnp.where(lane_pos == 0, boundary_prev, prev)   # (1, TILE_T)

    # keep[t] <=> survives unique_consecutive AND != blank
    keep = jnp.logical_and(idx != jnp.int32(blank), idx != prev)
    out_ref[...] = jnp.where(keep, idx, jnp.int32(-1)).reshape(1, 1, tile_t)


class GreedyCTCDecoderPallas:
    """Pallas/TPU GreedyCTCDecoder (same forward semantics as the PyTorch module)."""

    def __init__(self, labels, blank=0, tile_t=None, compute_dtype=jnp.float32):
        # tile_t: optional cap on the time tile (rounded to a multiple of 128).
        #   When None the tile is sized from a VMEM budget (_pick_tile_t).
        # compute_dtype: post-load compute dtype. float32 is safe on every
        #   generation (v5e has no bf16 VPU); pass None on v6e/v7x to compare
        #   directly in the input dtype (exact for max/==) and skip the cast.
        self.labels = labels
        self.blank = blank
        self.tile_t = tile_t
        self.compute_dtype = compute_dtype

    # ---- tiling / VMEM budget --------------------------------------------
    def _pick_tile_t(self, T, V, in_dtype, batch):
        in_bytes = jnp.dtype(in_dtype).itemsize
        v_lanes = _round_up(V, 128)   # input tile is lane-padded to 128
        v_sub = _round_up(V, 8)       # transposed temporaries are sublane-padded
        # Steady-state VMEM bytes per timestep:
        #   * main tile, double-buffered input DMA
        #   * transposed-space temporaries (e.T, label iota, compare/select, ...)
        #   * a handful of (1, TILE_T) int32 rows (idx/prev/keep/packed) plus
        #     the double-buffered (1, 1, TILE_T) output block.
        per_row = 2 * v_lanes * in_bytes + 8 * v_sub * 4 + 96 * 4

        cap = _vmem_capacity_bytes()
        # Raise the scoped limit above v5e's 16 MiB default but stay well under
        # v7x's 64 MiB physical VMEM; target a working set of half that limit.
        vmem_limit = int(min(cap // 2, 32 * _MIB))
        budget = vmem_limit // 2

        tile = max(128, (budget // per_row) // 128 * 128)
        if self.tile_t is not None:
            tile = min(tile, max(128, _round_up(self.tile_t, 128)))
        tile = min(tile, _round_up(T, 128))

        # v7x: both grid axes are "parallel" -- make sure there are >= 2 grid
        # steps so both TensorCores get work (split the single tile if needed).
        if batch * _cdiv(T, tile) < 2:
            half = _round_up(_cdiv(T, 2), 128)
            if half < tile:
                tile = half
        return tile, vmem_limit

    # ---- kernel entry points -----------------------------------------------
    def decode_indices_batched(self, emission):
        """emission: [B, T, V] logits -> int32[B, T] packed (idx if kept, else -1)."""
        B, T, V = emission.shape
        tile_t, vmem_limit = self._pick_tile_t(T, V, emission.dtype, B)
        num_tiles = _cdiv(T, tile_t)
        halo_blk = tile_t // 8   # 8-row halo blocks per time tile

        kernel = functools.partial(_greedy_ctc_kernel, self.blank, self.compute_dtype)
        packed = pl.pallas_call(
            kernel,
            out_shape=jax.ShapeDtypeStruct((B, num_tiles, 1, tile_t), jnp.int32),
            grid_spec=pltpu.PrefetchScalarGridSpec(
                num_scalar_prefetch=0,
                grid=(B, num_tiles),
                in_specs=[
                    # Main tile: (TILE_T, V), auto double-buffered.
                    pl.BlockSpec((None, tile_t, V), lambda b, i: (b, i, 0)),
                    # Halo: the 8 rows ending at this tile's first row (clamped
                    # to block 0 for tile 0, where it is ignored).
                    pl.BlockSpec((None, 8, V),
                                 lambda b, i: (b, jnp.maximum(i * halo_blk - 1, 0), 0)),
                ],
                # Lane-dense packed output: one (1, 1, TILE_T) row per grid step.
                out_specs=pl.BlockSpec((None, 1, 1, tile_t),
                                       lambda b, i: (b, i, 0, 0)),
            ),
            compiler_params=pltpu.CompilerParams(
                # Halo (not a serial carry) keeps both axes parallel, so v7x can
                # shard (batch x tile) steps across both TensorCores.
                dimension_semantics=("parallel", "parallel"),
                vmem_limit_bytes=vmem_limit,
            ),
        )(emission, emission)
        # Rows >= T of the (possibly partial) last tile are padding garbage;
        # this slice is what makes the result valid -- do not consume the raw
        # (B, num_tiles, 1, tile_t) output without it.
        return packed.reshape(B, num_tiles * tile_t)[:, :T]

    def decode_indices(self, emission):
        """emission: [T, V] logits -> int32[T] packed stream (idx if kept, else -1)."""
        return self.decode_indices_batched(emission[None])[0]

    def __call__(self, emission):
        """emission: [num_seq, num_label] logits -> list[str] transcript."""
        # NOTE: for many utterances, pad/stack them and call
        # decode_indices_batched once (one launch + one D2H, batch axis feeds
        # both v7x TensorCores).  Kept single-sequence here to match the
        # PyTorch module's forward signature.
        packed = jax.block_until_ready(self.decode_indices(emission))
        packed_np = np.asarray(packed)
        kept = packed_np[packed_np >= 0]
        joined = "".join(self.labels[int(i)] for i in kept)
        return joined.replace("|", " ").strip().split()


# ---- pure-numpy references of the PyTorch module's semantics ---------------
def _ref_packed(em_np, blank):
    idx = em_np.argmax(axis=-1).astype(np.int32)
    prev = np.concatenate([np.array([-1], np.int32), idx[:-1]])
    keep = (idx != blank) & (idx != prev)
    return np.where(keep, idx, -1).astype(np.int32)


def _ref_transcript(em_np, labels, blank):
    # torch order: argmax -> unique_consecutive -> drop blank -> join/split
    idx = em_np.argmax(axis=-1)
    uniq = [int(idx[0])] + [int(idx[t]) for t in range(1, len(idx)) if idx[t] != idx[t - 1]]
    kept = [i for i in uniq if i != blank]
    joined = "".join(labels[i] for i in kept)
    return joined.replace("|", " ").strip().split()


if __name__ == "__main__":
    # Deterministic label set (wav2vec2-style), blank = index 0 ('-').
    labels = (
        "-", "|", "E", "T", "A", "O", "N", "I", "H", "S", "R", "D", "L", "U",
        "M", "W", "C", "F", "G", "Y", "P", "B", "V", "K", "'", "X", "J", "Q", "Z",
    )
    blank = 0
    B, T, V = 2, 333, len(labels)   # small; T not a multiple of 128 -> partial last tile

    key = jax.random.PRNGKey(0)
    emission = jax.random.normal(key, (B, T, V), dtype=jnp.float32)
    em_np = np.asarray(emission)

    # 1) Forced 128-row tiles: exercises multiple time tiles, the halo
    #    boundary-carry path, and a partial last tile.
    dec_small = GreedyCTCDecoderPallas(labels, blank=blank, tile_t=128)
    packed = jax.block_until_ready(dec_small.decode_indices_batched(emission))
    packed_np = np.asarray(packed)
    for b in range(B):
        assert np.array_equal(packed_np[b], _ref_packed(em_np[b], blank)), b

    # 2) Auto (VMEM-budgeted) tile size, f32 input.
    dec_auto = GreedyCTCDecoderPallas(labels, blank=blank)
    packed_auto = jax.block_until_ready(dec_auto.decode_indices_batched(emission))
    assert np.array_equal(np.asarray(packed_auto), packed_np)

    # 3) bf16 logits (halves HBM traffic); reference computed from the bf16 values.
    em_bf16 = emission.astype(jnp.bfloat16)
    em_bf16_np = np.asarray(em_bf16.astype(jnp.float32))
    packed_bf16 = jax.block_until_ready(dec_auto.decode_indices_batched(em_bf16))
    packed_bf16_np = np.asarray(packed_bf16)
    for b in range(B):
        assert np.array_equal(packed_bf16_np[b], _ref_packed(em_bf16_np[b], blank)), b

    # 4) Tiny-T edge case (T < 8): main and halo blocks are partial.
    em_tiny = jax.random.normal(jax.random.PRNGKey(1), (5, V), dtype=jnp.float32)
    packed_tiny = jax.block_until_ready(dec_auto.decode_indices(em_tiny))
    assert np.array_equal(np.asarray(packed_tiny), _ref_packed(np.asarray(em_tiny), blank))

    # 5) End-to-end transcript (module __call__) vs torch-order reference.
    transcript = dec_auto(emission[0])
    assert transcript == _ref_transcript(em_np[0], labels, blank), transcript

    print("KERNEL_OK")
</pallas_src>

<mosaic_0001>
module attributes {stable_mosaic.version = 11 : i64} {
  func.func @_greedy_ctc_kernel(%arg0: i32, %arg1: i32, %arg2: memref<1x128x29xf32, #tpu.memory_space<vmem>>, %arg3: memref<1x8x29xf32, #tpu.memory_space<vmem>>, %arg4: memref<1x1x1x128xi32, #tpu.memory_space<vmem>>) attributes {dimension_semantics = [#tpu.dimension_semantics<parallel>, #tpu.dimension_semantics<parallel>], iteration_bounds = array<i64: 2, 3>, scalar_prefetch = 0 : i64, scratch_operands = 0 : i64, tpu.core_type = #tpu.core_type<tc>, window_params = [{transform_indices = @transform_0, window_bounds = array<i64: 1, 128, 29>}, {transform_indices = @transform_1, window_bounds = array<i64: 1, 8, 29>}, {transform_indices = @transform_2, window_bounds = array<i64: 1, 1, 1, 128>}]} {
    %c0 = arith.constant 0 : index
    %c0_0 = arith.constant 0 : index
    %c0_1 = arith.constant 0 : index
    %0 = vector.load %arg2[%c0, %c0_0, %c0_1] : memref<1x128x29xf32, #tpu.memory_space<vmem>>, vector<1x128x29xf32>
    %1 = vector.shape_cast %0 : vector<1x128x29xf32> to vector<128x29xf32>
    %2 = tpu.transpose %1, [1, 0] : vector<128x29xf32> -> vector<29x128xf32>
    %cst = arith.constant dense<0xFF800000> : vector<128xf32>
    %3 = vector.multi_reduction <maximumf>, %2, %cst [0] : vector<29x128xf32> to vector<128xf32>
    %4 = vector.shape_cast %3 : vector<128xf32> to vector<1x128xf32>
    %5 = tpu.iota {dimensions = array<i32: 0>} : vector<29x128xi32>
    %6 = vector.broadcast %4 : vector<1x128xf32> to vector<29x128xf32>
    %7 = arith.cmpf oeq, %2, %6 : vector<29x128xf32>
    %c29_i32 = arith.constant 29 : i32
    %8 = vector.broadcast %c29_i32 : i32 to vector<29x128xi32>
    %9 = arith.select %7, %5, %8 : vector<29x128xi1>, vector<29x128xi32>
    %cst_2 = arith.constant dense<2147483647> : vector<128xi32>
    %10 = vector.multi_reduction <minsi>, %9, %cst_2 [0] : vector<29x128xi32> to vector<128xi32>
    %11 = vector.shape_cast %10 : vector<128xi32> to vector<1x128xi32>
    %c1_i32 = arith.constant 1 : i32
    %12 = tpu.dynamic_rotate %11 by %c1_i32 dim 1 : vector<1x128xi32>, i32 -> vector<1x128xi32>
    %c0_3 = arith.constant 0 : index
    %c7 = arith.constant 7 : index
    %c0_4 = arith.constant 0 : index
    %13 = vector.load %arg3[%c0_3, %c7, %c0_4] : memref<1x8x29xf32, #tpu.memory_space<vmem>>, vector<1x1x29xf32>
    %14 = vector.shape_cast %13 : vector<1x1x29xf32> to vector<1x29xf32>
    %cst_5 = arith.constant dense<0xFF800000> : vector<1xf32>
    %15 = vector.multi_reduction <maximumf>, %14, %cst_5 [1] : vector<1x29xf32> to vector<1xf32>
    %16 = vector.shape_cast %15 : vector<1xf32> to vector<1x1xf32>
    %17 = tpu.iota {dimensions = array<i32: 1>} : vector<1x29xi32>
    %18 = vector.broadcast %16 : vector<1x1xf32> to vector<1x29xf32>
    %19 = arith.cmpf oeq, %14, %18 : vector<1x29xf32>
    %c29_i32_6 = arith.constant 29 : i32
    %20 = vector.broadcast %c29_i32_6 : i32 to vector<1x29xi32>
    %21 = arith.select %19, %17, %20 : vector<1x29xi1>, vector<1x29xi32>
    %cst_7 = arith.constant dense<2147483647> : vector<1xi32>
    %22 = vector.multi_reduction <minsi>, %21, %cst_7 [1] : vector<1x29xi32> to vector<1xi32>
    %23 = vector.shape_cast %22 : vector<1xi32> to vector<1x1xi32>
    %c0_i32 = arith.constant 0 : i32
    %24 = arith.cmpi eq, %arg1, %c0_i32 : i32
    %c-1_i32 = arith.constant -1 : i32
    %25 = vector.broadcast %c-1_i32 : i32 to vector<1x1xi32>
    %26 = arith.select %24, %25, %23 : vector<1x1xi32>
    %27 = tpu.iota {dimensions = array<i32: 1>} : vector<1x128xi32>
    %c0_i32_8 = arith.constant 0 : i32
    %28 = vector.broadcast %c0_i32_8 : i32 to vector<1x128xi32>
    %29 = arith.cmpi eq, %27, %28 : vector<1x128xi32>
    %30 = vector.shape_cast %26 : vector<1x1xi32> to vector<1x1xi32>
    %31 = vector.broadcast %30 : vector<1x1xi32> to vector<1x128xi32>
    %32 = arith.select %29, %31, %12 : vector<1x128xi1>, vector<1x128xi32>
    %c0_i32_9 = arith.constant 0 : i32
    %33 = vector.broadcast %c0_i32_9 : i32 to vector<1x128xi32>
    %34 = arith.cmpi ne, %11, %33 : vector<1x128xi32>
    %35 = arith.cmpi ne, %11, %32 : vector<1x128xi32>
    %36 = arith.andi %34, %35 : vector<1x128xi1>
    %c-1_i32_10 = arith.constant -1 : i32
    %37 = vector.broadcast %c-1_i32_10 : i32 to vector<1x128xi32>
    %38 = arith.select %36, %11, %37 : vector<1x128xi1>, vector<1x128xi32>
    %39 = vector.shape_cast %38 : vector<1x128xi32> to vector<1x1x128xi32>
    %c0_11 = arith.constant 0 : index
    %c0_12 = arith.constant 0 : index
    %c0_13 = arith.constant 0 : index
    %c0_14 = arith.constant 0 : index
    %40 = vector.load %arg4[%c0_11, %c0_12, %c0_13, %c0_14] : memref<1x1x1x128xi32, #tpu.memory_space<vmem>>, vector<1x1x1x128xi32>
    %41 = vector.shape_cast %40 : vector<1x1x1x128xi32> to vector<1x1x128xi32>
    %42 = vector.shape_cast %39 : vector<1x1x128xi32> to vector<1x1x1x128xi32>
    tpu.vector_store %arg4[%c0_11, %c0_12, %c0_13, %c0_14], %42 {strides = array<i32>} : memref<1x1x1x128xi32, #tpu.memory_space<vmem>>, vector<1x1x1x128xi32>,
    return
  }
  func.func @transform_0(%arg0: i32, %arg1: i32) -> (i32, i32, i32) {
    %c0_i32 = arith.constant 0 : i32
    %c0_i32_0 = arith.constant 0 : i32
    return %arg0, %arg1, %c0_i32 : i32, i32, i32
  }
  func.func @transform_1(%arg0: i32, %arg1: i32) -> (i32, i32, i32) {
    %c16_i32 = arith.constant 16 : i32
    %0 = arith.muli %arg1, %c16_i32 : i32
    %c1_i32 = arith.constant 1 : i32
    %1 = arith.subi %0, %c1_i32 : i32
    %c0_i32 = arith.constant 0 : i32
    %2 = arith.maxsi %1, %c0_i32 : i32
    %c0_i32_0 = arith.constant 0 : i32
    %c0_i32_1 = arith.constant 0 : i32
    return %arg0, %2, %c0_i32_0 : i32, i32, i32
  }
  func.func @transform_2(%arg0: i32, %arg1: i32) -> (i32, i32, i32, i32) {
    %c0_i32 = arith.constant 0 : i32
    %c0_i32_0 = arith.constant 0 : i32
    %c0_i32_1 = arith.constant 0 : i32
    return %arg0, %arg1, %c0_i32, %c0_i32_0 : i32, i32, i32, i32
  }
}

</mosaic_0001>

<bundles_post_ra>
// kernel: tpu_custom_call.1
= control target key start
LH: loop header
LB: loop body
LE: loop exit
PB: predicated region body
PF: predicated region fallthrough
CT: control target
= control target key end

     0   :  { %7 = vsyncpa [#allocation3], 0  ;;  %s843_s0 = inlined_call_operand.vmem [shape: f32[2,333,29], index: 0, kind: input, shape index: {}]   ;;  %s844_s1 = inlined_call_operand.vmem [shape: f32[2,333,29], index: 1, kind: input, shape index: {}]   ;;  %s845_s2 = inlined_call_operand.hbm [shape: s32[2,3,1,128], index: 2, kind: output, shape index: {}]  }
   0x1   :  { %9 = vsyncpa [#allocation3 + $0x1], 0  ;;  %s692_s9 = smov 0   ;;  %s694_s10 = smov 0  }
   0x2   :  { %s696_s11 = smov 0   ;;  %s698_s12 = smov 0  }
   0x3   :  { %s700_s13 = smov 0   ;;  %s702_s14 = smov 0  }
   0x4   :  { %s704_s15 = smov 0   ;;  %s706_s16 = smov 0  }
   0x5 LB: > { %s483_s17 = sadd.s32 4294967295, %s674_s16   ;;  %s484_s18 = sadd.s32 4294967294, %s674_s16   ;;  %s674_s16 = sphi %s706_s16, %s15_s16   ;;  %s670_s15 = sphi %s704_s15, %s854_s15   ;;  %s666_s14 = sphi %s702_s14, %s853_s14   ;;  %s662_s13 = sphi %s700_s13, %s852_s13   ;;  %s658_s12 = sphi %s698_s12, %s851_s12   ;;  %s654_s11 = sphi %s696_s11, %s850_s11   ;;  %s650_s10 = sphi %s694_s10, %s849_s10   ;;  %s646_s9 = sphi %s692_s9, %s848_s9  }
   0x6   : > { %s24_s19 = sadd.s32 1, %s666_s14  ;;  %s27_s20 = sadd.s32 1, %s670_s15 }
   0x7   : > { %p25_p0 = scmp.ge.s32.totalorder %s24_s19, 3  ;;  %p110_p1 = scmp.ne.s32.totalorder %s654_s11, %s650_s10 }
   0x8   : > { %p111_p2 = scmp.eq.s32.totalorder %s483_s17, 5  ;;  %p116_p5 = scmp.ne.s32.totalorder %s650_s10, %s646_s9 }
   0x9   : > { %s856_s19 = smov (%p25_p0, %s24_s19), 0  ;;  %s858_s20 = smov (!%p25_p0, %s27_s20), %s670_s15 }
   0xa   : > { %s96_s21 = ssub.s32 %s666_s14, %s856_s19  ;;  %p743_p3 = por %p111_p2, %p110_p1 }
   0xb   : > { %p29_p4 = scmp.ge.s32.totalorder %s858_s20, 2  ;;  %p117_p6 = scmp.eq.s32.totalorder %s484_s18, 5 }
   0xc   : > { %p491_p7 = scmp.ge.s32.totalorder %s674_s16, 1  ;;  %p175_p9 = scmp.lt.s32.totalorder %s674_s16, 7 }
   0xd   : > { %s860_s20 = smov (%p29_p4, %s858_s20), 0  ;;  %p752_p8 = por %p117_p6, %p116_p5 }
   0xe   : > { %s95_s24 = ssub.s32 %s670_s15, %s860_s20  ;;  %s100_s25 = sadd.s32 1, %s654_s11 }
   0xf   : > { %s97_s26 = sor.u32 %s96_s21, %s95_s24  ;;  %p176_p10 = pnand %p491_p7, %p175_p9 }
  0x10   : > { %p98_p11 = scmp.eq.s32.totalorder %s97_s26, 0  ;;  %s492_s28 = sshll.u32 (!%p176_p10), %s658_s12, 4 }
  0x11   : > { %179 = sbr.rel (%p176_p10) target bundleno = 400 (0x190), region = 28  ;;  %p221_p12 = scmp.lt.s32.totalorder (!%p176_p10), %s662_s13, 1 }
  0x12   : > { %s761_s27 = scalar_select %p98_p11, %s654_s11, %s100_s25  }
  0x13   : > { %s495_s29 = sadd.s32 (!%p176_p10), 4294967295, %s492_s28  ;;  %p223_p1 = scmp.lt.s32.totalorder (!%p176_p10), %s492_s28, 41 }
  0x14   : > { %p236_p13 = scmp.gt.s32.totalorder (!%p176_p10), %s495_s29, 0  ;;  %p496_p0 = scmp.lt.s32.totalorder (!%p176_p10), %s495_s29, 41 }
  0x15   : > { %s676_s26 = smov (!%p176_p10), 1   ;;  %p364_p2 = scmp.eq.s32.totalorder (!%p176_p10), %s658_s12, 0 }
  0x16   : > { %s222_s30 = scalar_select %p221_p12, %s662_s13, 1  ;;  %vm341_vm0 = vcmask 229376   ;;  %v309_v11 = vlaneseq  ;;  %vm298_vm2 = vcmask 1044480  }
  0x17   : > { %s862_s29 = smov (!%p236_p13, %s495_s29), 0  ;;  %s866_s28 = smov (!%p223_p1, %s492_s28), 41 }
  0x18   : > { %s506_s3 = smul.u32 42, %s222_s30  ;;  %s864_s29 = smov (!%p496_p0, %s862_s29), 41  ;;  %v785_v13 = vand.u32 127, %v309_v11  ;;  %v310_v39 = vshrl.u32 %v309_v11, 7 }
  0x19   : > { %s214_s30 = sand.u32 1, %s650_s10  }
  0x1a   : > { %s243_s4 = sadd.s32 %s506_s3, %s864_s29  ;;  %s226_s17 = sadd.s32 %s506_s3, %s866_s28  ;;  %v311_v43 = vadd.s32 8, %v310_v39  ;;  %v312_v44 = vadd.s32 16, %v310_v39  ;;  %v313_v45 = vadd.s32 24, %v310_v39  ;;  %vm369_vm15 = vcmp.eq.s32.totalorder %v785_v13, 0 }
  0x1b   : > { %s501_s5 = sshll.u32 %s243_s4, 3  ;;  %s493_s18 = sshll.u32 %s226_s17, 3 }
  0x1c   : > { %s245_s8 = scalar_lea.vmem %s844_s1, %s501_s5  ;;  %s773_s25 = scalar_lea.vmem %s843_s0, %s493_s18 }
  0x1d   : > { %v340_v0 = vld [vmem:[%s245_s8 + $0x7] sm:$0x1]  ;;  %v251_v3 = vld [vmem:[%s773_s25 + $0x8] sm:$0xff]  ;;  %v252_v4 = vld [vmem:[%s773_s25 + $0x10] sm:$0xff]  ;;  %s365_s28 = scalar_select %p364_p2, 1, 0 }
  0x1e   : > { %v342_v1 = vsel %vm341_vm0, %v340_v0, -inf  ;;  %v250_v2 = vld [vmem:[%s773_s25] sm:$0xff]  ;;  %v253_v5 = vld [vmem:[%s773_s25 + $0x18] sm:$0xff]  ;;  %v255_v7 = vld [vmem:[%s773_s25 + $0x28] sm:$0xff]  ;;  %s507_s29 = smul.u32 3, %s662_s13  ;;  %s215_s7 = scalar_lea.vmem [#allocation2], %s214_s30 }
  0x1f   : > { %343 = vmax.xlane.f32.xlu0 %v342_v1  ;;  %v254_v6 = vld [vmem:[%s773_s25 + $0x20] sm:$0xff]  ;;  %v256_v8 = vld [vmem:[%s773_s25 + $0x30] sm:$0xff]  ;;  %v257_v9 = vld [vmem:[%s773_s25 + $0x38] sm:$0xff]  ;;  %v366_v62 = vstv %s365_s28  ;;  %s389_s13 = sshll.u32 %s215_s7, 4  ;;  %s390_s13 = int_to_ptr.vmem [resolvable:$true] %s389_s13 }
  0x20   : > { %v258_v10 = vld [vmem:[%s773_s25 + $0x40] sm:$0xff]  ;;  %v259_v12 = vld [vmem:[%s773_s25 + $0x48] sm:$0xff]  ;;  %v260_v17 = vld [vmem:[%s773_s25 + $0x50] sm:$0xff]  ;;  %s386_s3 = sadd.s32 %s658_s12, %s507_s29  ;;  %vm367_vm14 = vcmp.eq.s32.totalorder %v366_v62, 1  ;;  %s377_s12 = scalar_lea.sflag [#allocation3], %s214_s30 }
  0x21   : > { %v261_v20 = vld [vmem:[%s773_s25 + $0x58] sm:$0xff]  ;;  %v262_v21 = vld [vmem:[%s773_s25 + $0x60] sm:$0xff]  ;;  %v263_v22 = vld [vmem:[%s773_s25 + $0x68] sm:$0xff]  ;;  %s387_s6 = scalar_lea.hbm %s845_s2, %s386_s3 }
  0x22   : > { %v264_v23 = vld [vmem:[%s773_s25 + $0x70] sm:$0xff]  ;;  %v265_v24 = vld [vmem:[%s773_s25 + $0x78] sm:$0xff]  ;;  %s391_s8 = sshll.u32 %s387_s6, 4  ;;  %s600_s25 = scalar_lea.hbm %s845_s2, 6  ;;  %s392_s8 = int_to_ptr.hbm [resolvable:$true] %s391_s8 }
  0x23   : > { %s594_s17 = sshra.s32 %s392_s8, 4  ;;  %s595_s17 = int_to_ptr.hbm [resolvable:$true] %s594_s17 }
  0x24   : > { %s596_s18 = scalar_lea.hbm %s595_s17, 1  ;;  %p601_p7 = scmp.lt.s32.totalorder %s595_s17, %s845_s2 }
  0x25   : > { %p597_p4 = scmp.ne.s32.totalorder %s595_s17, %s596_s18  ;;  %p602_p9 = scmp.lt.s32.totalorder %s600_s25, %s596_s18 }
  0x27   : > { %p598_p5 = pnand %p597_p4, %p743_p3  ;;  %p603_p10 = por %p602_p9, %p601_p7 }
  0x29   : > { %p599_p6 = pneg %p598_p5 }
  0x2b   : > { %p604_p11 = pnand %p603_p10, %p599_p6 }
  0x48   : > { %266 = vxpose.xlu0.b32.start [1/16] (narrow) %v250_v2, 32 }
  0x50   : > { %267 = vxpose.xlu0.b32.cont [2/16] (narrow) %v251_v3, 32 }
  0x58   : > { %268 = vxpose.xlu0.b32.cont [3/16] (narrow) %v252_v4, 32 }
  0x60   : > { %269 = vxpose.xlu0.b32.cont [4/16] (narrow) %v253_v5, 32 }
  0x68   : > { %270 = vxpose.xlu0.b32.cont [5/16] (narrow) %v254_v6, 32 }
  0x70   : > { %271 = vxpose.xlu0.b32.cont [6/16] (narrow) %v255_v7, 32 }
  0x78   : > { %272 = vxpose.xlu0.b32.cont [7/16] (narrow) %v256_v8, 32 }
  0x80   : > { %273 = vxpose.xlu0.b32.cont [8/16] (narrow) %v257_v9, 32 }
  0x88   : > { %274 = vxpose.xlu0.b32.cont [9/16] (narrow) %v258_v10, 32 }
  0x90   : > { %275 = vxpose.xlu0.b32.cont [10/16] (narrow) %v259_v12, 32 }
  0x92   : > { %v344_v14 = vpop.xlane.xlu0 %343 }
  0x93   : > { %vm347_vm1 = vcmp.eq.f32.partialorder %v340_v0, %v344_v14 }
  0x94   : > { %v348_v15 = vsel %vm347_vm1, %v785_v13, 29 }
  0x95   : > { %v349_v16 = vsel %vm341_vm0, %v348_v15, 2147483647 }
  0x96   : > { %v351_v18 = vshra.s32 %v349_v16, 16  ;;  %v350_v33 = vand.u32 65535, %v349_v16 }
  0x98   : > { %276 = vxpose.xlu0.b32.cont [11/16] (narrow) %v260_v17, 32  ;;  %v353_v19 = vcvt.s32.f32 %v351_v18  ;;  %v352_v37 = vcvt.s32.f32 %v350_v33 }
  0x9a   : > { %354 = vmin.xlane.f32.xlu1 %v353_v19 }
  0xa0   : > { %277 = vxpose.xlu0.b32.cont [12/16] (narrow) %v261_v20, 32 }
  0xa8   : > { %278 = vxpose.xlu0.b32.cont [13/16] (narrow) %v262_v21, 32 }
  0xb0   : > { %279 = vxpose.xlu0.b32.cont [14/16] (narrow) %v263_v22, 32 }
  0xb8   : > { %280 = vxpose.xlu0.b32.cont [15/16] (narrow) %v264_v23, 32 }
  0xc0   : > { %281 = vxpose.xlu0.b32.end [16/16] (narrow) %v265_v24, 32 }
  0xec   : > { %v282_v25 = vpop.trf.xlu0 }
  0xf4   : > { %v283_v26 = vpop.trf.xlu0 }
  0xf5   : > { %v300_v30 = vmax.f32 %v282_v25, %v283_v26 }
  0xfc   : > { %v284_v27 = vpop.trf.xlu0 }
 0x104   : > { %v285_v28 = vpop.trf.xlu0 }
 0x105   : > { %v299_v29 = vsel %vm298_vm2, %v285_v28, -inf }
 0x106   : > { %v301_v31 = vmax.f32 %v284_v27, %v299_v29 }
 0x108   : > { %v302_v32 = vmax.f32 %v300_v30, %v301_v31 }
 0x10a   : > { %v303_v34 = vrot.slane %v302_v32, 4 }
 0x10c   : > { %v304_v35 = vmax.f32 %v302_v32, %v303_v34 }
 0x10d   : > { %v355_v36 = vpop.xlane.xlu1 %354 }
 0x10e   : > { %v305_v38 = vrot.slane %v304_v35, 2  ;;  %vm356_vm3 = vcmp.eq.f32.partialorder %v353_v19, %v355_v36  ;;  %v361_v61 = vcvt.f32.s32 %v355_v36 }
 0x10f   : > { %v357_v40 = vsel %vm356_vm3, %v352_v37, inf }
 0x110   : > { %v306_v41 = vmax.f32 %v304_v35, %v305_v38  ;;  %358 = vmin.xlane.f32.xlu1 %v357_v40  ;;  %v362_v0 = vshll.u32 %v361_v61, 16 }
 0x112   : > { %v307_v42 = vrot.slane %v306_v41, 1 }
 0x114   : > { %v308_v46 = vmax.f32 %v306_v41, %v307_v42 }
 0x116   : > { %vm314_vm4 = vcmp.eq.f32.partialorder %v282_v25, %v308_v46  ;;  %vm315_vm5 = vcmp.eq.f32.partialorder %v283_v26, %v308_v46  ;;  %vm316_vm6 = vcmp.eq.f32.partialorder %v284_v27, %v308_v46  ;;  %vm317_vm7 = vcmp.eq.f32.partialorder %v285_v28, %v308_v46 }
 0x117   : > { %v318_v47 = vsel %vm314_vm4, %v310_v39, 29  ;;  %v319_v48 = vsel %vm315_vm5, %v311_v43, 29  ;;  %v320_v49 = vsel %vm316_vm6, %v312_v44, 29  ;;  %v321_v50 = vsel %vm317_vm7, %v313_v45, 29 }
 0x118   : > { %v322_v51 = vsel %vm298_vm2, %v321_v50, 2147483647  ;;  %vm323_vm8 = vcmp.lt.s32.totalorder %v318_v47, %v319_v48 }
 0x119   : > { %v324_v52 = vsel %vm323_vm8, %v318_v47, %v319_v48  ;;  %vm325_vm9 = vcmp.lt.s32.totalorder %v320_v49, %v322_v51 }
 0x11a   : > { %v326_v53 = vsel %vm325_vm9, %v320_v49, %v322_v51 }
 0x11b   : > { %vm327_vm10 = vcmp.lt.s32.totalorder %v324_v52, %v326_v53 }
 0x11c   : > { %v328_v54 = vsel %vm327_vm10, %v324_v52, %v326_v53 }
 0x11d   : > { %v329_v55 = vrot.slane %v328_v54, 4 }
 0x11f   : > { %vm330_vm11 = vcmp.lt.s32.totalorder %v328_v54, %v329_v55 }
 0x120   : > { %v331_v56 = vsel %vm330_vm11, %v328_v54, %v329_v55 }
 0x121   : > { %v332_v57 = vrot.slane %v331_v56, 2 }
 0x123   : > { %vm333_vm12 = vcmp.lt.s32.totalorder %v331_v56, %v332_v57 }
 0x124   : > { %v334_v58 = vsel %vm333_vm12, %v331_v56, %v332_v57 }
 0x125   : > { %v335_v59 = vrot.slane %v334_v58, 1 }
 0x127   : > { %vm336_vm13 = vcmp.lt.s32.totalorder %v334_v58, %v335_v59 }
 0x128   : > { %v337_v60 = vsel %vm336_vm13, %v334_v58, %v335_v59 }
 0x129   : > { %338 = vrot.lane.b32.xlu2 %v337_v60, %s676_s26  ;;  %vm371_vm0 = vcmp.ne.s32.totalorder %v337_v60, 0 }
 0x183   : > { %v359_v63 = vpop.xlane.xlu1 %358  ;;  %v339_v4 = vpop.permute.xlu2 %338 }
 0x184   : > { %v360_v1 = vcvt.f32.s32 %v359_v63 }
 0x186   : > { %v363_v2 = vadd.s32 %v362_v0, %v360_v1 }
 0x188   : > { %v368_v3 = vsel %vm367_vm14, 4294967295, %v363_v2 }
 0x189   : > { %v370_v5 = vsel %vm369_vm15, %v368_v3, %v339_v4 }
 0x18a   : > { %vm372_vm1 = vcmp.ne.s32.totalorder %v337_v60, %v370_v5 }
 0x18b   : > { %vm373_vm2 = vmand %vm371_vm0, %vm372_vm1 }
 0x18c   : > { %v374_v6 = vsel %vm373_vm2, %v337_v60, 4294967295 }
 0x18d   : > { %375 = vst [vmem:[%s215_s7] sm:$0x1] %v374_v6 }
 0x18e   : > { %607 = shalt.err (!%p604_p11)
}
 0x18f   : > { %508 = dma.vmem_to_hbm [thread:$0]  (%p743_p3), %s390_s13, 16, %s392_s8, %s377_s12  }
 0x190 PF: > { %p514_p12 = scmp.ge.s32.totalorder %s674_s16, 2  ;;  %s403_s29 = sand.u32 1, %s646_s9  }
 0x191   : > { %s404_s30 = scalar_lea.sflag [#allocation3], %s403_s29 }
 0x192   : > { %p511_p13 = pnand %p514_p12, %p752_p8 }
 0x194   : > { %p512_p0 = pneg %p511_p13 }
 0x196   : > { %641 = dma.done.wait (%p512_p0), %s404_s30, 16  }
 0x197   : > { %643 = vsyncadd (%p512_p0), %s404_s30, 4294967280  ;;  %s15_s16 = sadd.s32 1, %s674_s16   ;;  %s848_s9 = smov %s650_s10 }
 0x198   : > { %p12_p1 = scmp.ge.s32.totalorder %s15_s16, 8   ;;  %s849_s10 = smov %s654_s11 }
 0x199   : > { %s850_s11 = smov %s761_s27  ;;  %s851_s12 = smov %s666_s14 }
 0x19a   : > { %s852_s13 = smov %s670_s15  ;;  %s853_s14 = smov %s856_s19 }
 0x19b   : > { %s854_s15 = smov %s860_s20  ;;  %14 = sbr.rel (!%p12_p1) target bundleno = 5 (0x5), region = 66 }
 0x1a0   :  { %409 = vsyncpa [#allocation3], 1 }
 0x1a1   :  { %411 = vsyncpa [#allocation3 + $0x1], 1 }

</bundles_post_ra>
